<compile_context>
chip_gen: v5e
topology: v5e:2x2
jax: 0.10.0
libtpu: 0.0.40
codegen_flags: <defaults>
</compile_context>

<pallas_src>
import functools

import jax
import jax.numpy as jnp
from jax.experimental import pallas as pl
from jax.experimental.pallas import tpu as pltpu


# pltpu.roll lowers to the XLU dynamic-rotate (an otherwise-idle slot in this
# mem-bound kernel), but it is a Mosaic-only primitive; use a plain-jnp roll
# when the default backend is not a TPU so the kernel also runs in CPU /
# interpret environments.
try:
    _USE_TPU_ROLL = jax.default_backend() == "tpu"
except Exception:  # pragma: no cover — backend probing must not kill import
    _USE_TPU_ROLL = False


def _rotate_half(x):
    """[x1, x2] -> [x2, x1] via a D/2 lane rotation.

    The rotate_half sign flip is folded into the sin table, so a plain roll is
    exact.  shift == D/2 makes the roll direction irrelevant.
    """
    d = x.shape[-1]
    half = d // 2
    if _USE_TPU_ROLL:
        x2d = x.reshape(-1, d)  # collapse leading dims: layout-preserving no-op
        return pltpu.roll(x2d, shift=half, axis=1).reshape(x.shape)
    return jnp.roll(x, shift=half, axis=-1)


def _rope_kernel(x_ref, cos_ref, sin_ref, o_ref):
    # x block: (TBH, TS, D) native dtype; cos/sin blocks: (TS, D) f32.
    x_nat = x_ref[...]
    rot_nat = _rotate_half(x_nat)          # roll BEFORE the upcast (perf review)
    x = x_nat.astype(jnp.float32)
    rot = rot_nat.astype(jnp.float32)
    cos = cos_ref[...]                     # (TS, D) f32
    sin_signed = sin_ref[...]              # (TS, D) f32 == concat([-sin, sin])
    # TODO(synk): for bf16 inputs on v6e/v7x the multiply-add could stay in
    # bf16 (bf16 VPU) to halve vreg pressure; kept in f32 for exactness & v5e.
    o_ref[...] = (x * cos[None] + rot * sin_signed[None]).astype(o_ref.dtype)


def _pick_tile(total: int, target: int, multiple: int) -> int:
    """Largest divisor of `total` <= target that is a multiple of `multiple`.

    Falls back to `total` (full-extent block, always legal) if none exists.
    """
    if total <= target:
        return total
    for t in range(target, 0, -1):
        if total % t == 0 and t % multiple == 0:
            return t
    return total


@functools.lru_cache(maxsize=64)
def _rope_tables(seq_len: int, offset: int, base: float, half: int):
    """cos / sign-folded sin tables, cached across calls (perf-review item).

    Matches the PyTorch module's _build_cache followed by the [offset:offset+S]
    slice.  Returned arrays are device-resident and reused by later calls with
    the same (seq_len, offset, base, half).
    """
    positions = jnp.arange(offset, offset + seq_len, dtype=jnp.float32)          # (S,)
    frequencies = 1.0 / (base ** (jnp.arange(half, dtype=jnp.float32) / half))   # (half,)
    angles = positions[:, None] * frequencies[None, :]                           # (S, half)
    cos_h = jnp.cos(angles)
    sin_h = jnp.sin(angles)
    cos = jnp.concatenate([cos_h, cos_h], axis=-1)                               # (S, D)
    # Sign-folded so that rotate_half(x)*sin == roll(x, half) * sin_signed.
    sin_signed = jnp.concatenate([-sin_h, sin_h], axis=-1)                       # (S, D)
    return cos, sin_signed


def rope_forward(x: jax.Array, offset: int = 0, base: float = 10000.0) -> jax.Array:
    """Apply rotary positional embeddings.

    Args:
      x: (batch, heads, seq_len, embed_dim), embed_dim even.
      offset: position offset into the sin/cos cache.
    Returns:
      Array of same shape/dtype as x.
    """
    B, H, S, D = x.shape
    assert D % 2 == 0, "embed_dim must be even"
    half = D // 2

    cos, sin_signed = _rope_tables(S, int(offset), float(base), half)

    BH = B * H
    # TODO(synk): if head_dim < 128, pack 128/D heads side-by-side in the lane
    # dim here so the trailing output dim stays a multiple of 128 (avoids
    # masked vst.msk partial stores).
    x_flat = x.reshape(BH, S, D)

    itemsize = jnp.dtype(x.dtype).itemsize
    # Sequence tile: multiple of 8 (sublane), capped at 512 table rows.
    TS = _pick_tile(S, 512, 8)
    # Batch*head tile: size the x block to ~4 MiB to amortize the ~0.35 us
    # per-grid-step overhead (fits every generation with the explicit
    # vmem_limit below).
    row_bytes = TS * D * itemsize
    max_tbh = max(1, (4 * 1024 * 1024) // row_bytes)
    # Keep >=2 grid steps along a parallel axis so v7x's 2nd TensorCore works.
    if S // TS < 2 and BH >= 2:
        max_tbh = min(max_tbh, BH // 2)
    TBH = _pick_tile(BH, int(max_tbh), 1)

    # Sequence-tile axis OUTER, BH-tile axis INNER: cos/sin block indices are
    # constant across the inner axis, so the tables are not re-DMA'd per step.
    grid = (S // TS, BH // TBH)

    # Scoped-VMEM budget: double-buffered x in/out blocks + double-buffered
    # table blocks + slack.  Explicit so v5e's 16 MiB scoped default doesn't
    # bite; capped well under v7x's 64 MiB physical VMEM.
    x_block_bytes = TBH * TS * D * itemsize
    tab_block_bytes = TS * D * 4
    vmem_limit = min(max(4 * x_block_bytes + 4 * tab_block_bytes + (4 << 20),
                         32 << 20), 48 << 20)

    out_flat = pl.pallas_call(
        _rope_kernel,
        out_shape=jax.ShapeDtypeStruct((BH, S, D), x.dtype),
        grid_spec=pltpu.PrefetchScalarGridSpec(
            num_scalar_prefetch=0,
            grid=grid,
            in_specs=[
                pl.BlockSpec((TBH, TS, D), lambda s, b: (b, s, 0)),  # x block
                pl.BlockSpec((TS, D), lambda s, b: (s, 0)),          # cos (bcast b,h)
                pl.BlockSpec((TS, D), lambda s, b: (s, 0)),          # sin (sign-folded)
            ],
            out_specs=pl.BlockSpec((TBH, TS, D), lambda s, b: (b, s, 0)),
        ),
        compiler_params=pltpu.CompilerParams(
            dimension_semantics=("parallel", "parallel"),
            vmem_limit_bytes=int(vmem_limit)),
        # TODO(synk): pass input_output_aliases={0: 0} when the caller donates x
        # (in-place RoPE) to halve the HBM footprint for long prefill.
    )(x_flat, cos, sin_signed)

    return out_flat.reshape(B, H, S, D)


def rope_reference(x: jax.Array, offset: int = 0, base: float = 10000.0) -> jax.Array:
    """Pure-JAX reference mirroring the PyTorch forward."""
    B, H, S, D = x.shape
    half = D // 2
    positions = jnp.arange(offset, offset + S, dtype=jnp.float32)
    frequencies = 1.0 / (base ** (jnp.arange(half, dtype=jnp.float32) / half))
    angles = positions[:, None] * frequencies[None, :]
    cos = jnp.concatenate([jnp.cos(angles), jnp.cos(angles)], axis=-1)[None, None]
    sin = jnp.concatenate([jnp.sin(angles), jnp.sin(angles)], axis=-1)[None, None]
    x1, x2 = x[..., :half], x[..., half:]
    rot = jnp.concatenate([-x2, x1], axis=-1)
    out = x.astype(jnp.float32) * cos + rot.astype(jnp.float32) * sin
    return out.astype(x.dtype)


if __name__ == "__main__":
    # Small shapes consistent with the module: (batch, heads, seq_len, embed_dim).
    # D=128 keeps the trailing (lane) dim dense -> unmasked stores.
    B, H, S, D = 2, 4, 16, 128
    key = jax.random.PRNGKey(0)
    x = jax.random.normal(key, (B, H, S, D), dtype=jnp.float32)

    out = jax.block_until_ready(rope_forward(x, offset=0))
    ref = rope_reference(x, offset=0)
    assert out.shape == x.shape and out.dtype == x.dtype
    assert jnp.allclose(out, ref, atol=1e-5, rtol=1e-5), "mismatch vs reference (offset=0)"

    out3 = jax.block_until_ready(rope_forward(x, offset=3))
    ref3 = rope_reference(x, offset=3)
    assert jnp.allclose(out3, ref3, atol=1e-5, rtol=1e-5), "mismatch vs reference (offset=3)"

    print("KERNEL_OK")
</pallas_src>

<mosaic_0001>
module attributes {stable_mosaic.version = 11 : i64} {
  func.func @_rope_kernel(%arg0: i32, %arg1: i32, %arg2: memref<4x16x128xf32, #tpu.memory_space<vmem>>, %arg3: memref<16x128xf32, #tpu.memory_space<vmem>>, %arg4: memref<16x128xf32, #tpu.memory_space<vmem>>, %arg5: memref<4x16x128xf32, #tpu.memory_space<vmem>>) attributes {dimension_semantics = [#tpu.dimension_semantics<parallel>, #tpu.dimension_semantics<parallel>], iteration_bounds = array<i64: 1, 2>, scalar_prefetch = 0 : i64, scratch_operands = 0 : i64, tpu.core_type = #tpu.core_type<tc>, window_params = [{transform_indices = @transform_0, window_bounds = array<i64: 4, 16, 128>}, {transform_indices = @transform_1, window_bounds = array<i64: 16, 128>}, {transform_indices = @transform_2, window_bounds = array<i64: 16, 128>}, {transform_indices = @transform_3, window_bounds = array<i64: 4, 16, 128>}]} {
    %c0 = arith.constant 0 : index
    %c0_0 = arith.constant 0 : index
    %c0_1 = arith.constant 0 : index
    %0 = vector.load %arg2[%c0, %c0_0, %c0_1] : memref<4x16x128xf32, #tpu.memory_space<vmem>>, vector<4x16x128xf32>
    %1 = vector.extract_strided_slice %0 {offsets = [0, 0, 64], sizes = [4, 16, 64], strides = [1, 1, 1]} : vector<4x16x128xf32> to vector<4x16x64xf32>
    %2 = vector.extract_strided_slice %0 {offsets = [0, 0, 0], sizes = [4, 16, 64], strides = [1, 1, 1]} : vector<4x16x128xf32> to vector<4x16x64xf32>
    %3 = tpu.concatenate %1, %2 in 2 : vector<4x16x64xf32>, vector<4x16x64xf32> -> vector<4x16x128xf32>
    %c0_2 = arith.constant 0 : index
    %c0_3 = arith.constant 0 : index
    %4 = vector.load %arg3[%c0_2, %c0_3] : memref<16x128xf32, #tpu.memory_space<vmem>>, vector<16x128xf32>
    %c0_4 = arith.constant 0 : index
    %c0_5 = arith.constant 0 : index
    %5 = vector.load %arg4[%c0_4, %c0_5] : memref<16x128xf32, #tpu.memory_space<vmem>>, vector<16x128xf32>
    %6 = vector.shape_cast %4 : vector<16x128xf32> to vector<1x16x128xf32>
    %7 = vector.broadcast %6 : vector<1x16x128xf32> to vector<4x16x128xf32>
    %8 = arith.mulf %0, %7 : vector<4x16x128xf32>
    %9 = vector.shape_cast %5 : vector<16x128xf32> to vector<1x16x128xf32>
    %10 = vector.broadcast %9 : vector<1x16x128xf32> to vector<4x16x128xf32>
    %11 = arith.mulf %3, %10 : vector<4x16x128xf32>
    %12 = arith.addf %8, %11 : vector<4x16x128xf32>
    %c0_6 = arith.constant 0 : index
    %c0_7 = arith.constant 0 : index
    %c0_8 = arith.constant 0 : index
    %13 = vector.load %arg5[%c0_6, %c0_7, %c0_8] : memref<4x16x128xf32, #tpu.memory_space<vmem>>, vector<4x16x128xf32>
    tpu.vector_store %arg5[%c0_6, %c0_7, %c0_8], %12 {strides = array<i32>} : memref<4x16x128xf32, #tpu.memory_space<vmem>>, vector<4x16x128xf32>,
    return
  }
  func.func @transform_0(%arg0: i32, %arg1: i32) -> (i32, i32, i32) {
    %c0_i32 = arith.constant 0 : i32
    %c0_i32_0 = arith.constant 0 : i32
    return %arg1, %arg0, %c0_i32 : i32, i32, i32
  }
  func.func @transform_1(%arg0: i32, %arg1: i32) -> (i32, i32) {
    %c0_i32 = arith.constant 0 : i32
    %c0_i32_0 = arith.constant 0 : i32
    return %arg0, %c0_i32 : i32, i32
  }
  func.func @transform_2(%arg0: i32, %arg1: i32) -> (i32, i32) {
    %c0_i32 = arith.constant 0 : i32
    %c0_i32_0 = arith.constant 0 : i32
    return %arg0, %c0_i32 : i32, i32
  }
  func.func @transform_3(%arg0: i32, %arg1: i32) -> (i32, i32, i32) {
    %c0_i32 = arith.constant 0 : i32
    %c0_i32_0 = arith.constant 0 : i32
    return %arg1, %arg0, %c0_i32 : i32, i32, i32
  }
}

</mosaic_0001>

<bundles_post_ra>
// kernel: tpu_custom_call.1
= control target key start
LH: loop header
LB: loop body
LE: loop exit
PB: predicated region body
PF: predicated region fallthrough
CT: control target
= control target key end

     0   :  { %8 = vsyncpa [#allocation3], 0  ;;  %s954_s0 = inlined_call_operand.hbm [shape: f32[8,16,128], index: 0, kind: input, shape index: {}]   ;;  %s955_s1 = inlined_call_operand.hbm [shape: f32[16,128], index: 1, kind: input, shape index: {}]   ;;  %s956_s2 = inlined_call_operand.hbm [shape: f32[16,128], index: 2, kind: input, shape index: {}]   ;;  %s957_s3 = inlined_call_operand.hbm [shape: f32[8,16,128], index: 3, kind: output, shape index: {}]  }
   0x1   :  { %10 = vsyncpa [#allocation3 + $0x1], 0 }
   0x2   :  { %11 = vsyncpa [#allocation6], 0 }
   0x3   :  { %12 = vsyncpa [#allocation4], 0 }
   0x4   :  { %14 = vsyncpa [#allocation4 + $0x1], 0  ;;  %s788_s12 = smov 0   ;;  %s790_s13 = smov 0  }
   0x5   :  { %s792_s14 = smov 0   ;;  %s794_s15 = smov 0  }
   0x6   :  { %s796_s16 = smov 0   ;;  %s798_s17 = smov 0  }
   0x7 LB: > { %s470_s18 = sadd.s32 4294967295, %s759_s17   ;;  %s471_s19 = sadd.s32 4294967294, %s759_s17   ;;  %s759_s17 = sphi %s798_s17, %s20_s17   ;;  %s755_s16 = sphi %s796_s16, %s967_s16   ;;  %s751_s15 = sphi %s794_s15, %s966_s15   ;;  %s747_s14 = sphi %s792_s14, %s965_s14   ;;  %s743_s13 = sphi %s790_s13, %s964_s13   ;;  %s739_s12 = sphi %s788_s12, %s963_s12  }
   0x8   : > { %p54_p0 = scmp.ne.s32.totalorder %s743_s13, %s739_s12  ;;  %p824_p1 = scmp.eq.s32.totalorder %s470_s18, 0 }
   0x9   : > { %p138_p2 = scmp.eq.s32.totalorder %s471_s19, 1  ;;  %p472_p4 = scmp.ge.s32.totalorder %s759_s17, 1 }
   0xa   : > { %p830_p3 = por %p824_p1, %p54_p0  ;;  %p145_p6 = scmp.lt.s32.totalorder %s759_s17, 3 }
   0xb   : > { %p835_p5 = por %p138_p2, %p54_p0  ;;  %s159_s25 = sshll.u32 %s955_s1, 4  ;;  %s160_s25 = int_to_ptr.hbm [resolvable:$true] %s159_s25 }
   0xc   : > { %p843_p7 = pnand %p472_p4, %p145_p6  ;;  %s761_s27 = smov [#allocation5]  }
   0xd   : > { %s161_s28 = sshll.u32 %s761_s27, 4  ;;  %p475_p10 = scmp.ge.s32.totalorder %s759_s17, 2  ;;  %s162_s28 = int_to_ptr.vmem [resolvable:$true] %s161_s28 }
   0xe   : > { %p507_p8 = pneg %p843_p7  ;;  %s176_s4 = sshll.u32 %s956_s2, 4  ;;  %s177_s4 = int_to_ptr.hbm [resolvable:$true] %s176_s4 }
   0xf   : > { %s762_s5 = smov 128   ;;  %s763_s6 = smov 8  }
  0x10   : > { %p508_p9 = pnand %p507_p8, %p824_p1  ;;  %s764_s7 = smov [#allocation7]  }
  0x11   : > { %s178_s8 = sshll.u32 %s764_s7, 4  ;;  %p132_p11 = scmp.eq.s32.totalorder %s470_s18, 1  ;;  %s179_s8 = int_to_ptr.vmem [resolvable:$true] %s178_s8 }
  0x12   : > { %510 = dma.hbm_to_vmem [thread:$0]  (!%p508_p9), %s160_s25, 256, %s162_s28, [#allocation6], %s762_s5, %s762_s5, %s763_s6  }
  0x13   : > { %513 = dma.hbm_to_vmem [thread:$0]  (!%p508_p9), %s177_s4, 256, %s179_s8, [#allocation6], %s762_s5, %s762_s5, %s763_s6  }
  0x14   : > { %s29_s9 = sadd.s32 1, %s755_s16  ;;  %s41_s10 = sadd.s32 1, %s747_s14 }
  0x15   : > { %p30_p12 = scmp.ge.s32.totalorder %s29_s9, 2  ;;  %p48_p13 = scmp.ne.s32.totalorder %s747_s14, %s743_s13 }
  0x16   : > { %p49_p0 = scmp.eq.s32.totalorder %s759_s17, 0  ;;  %p524_p4 = scmp.lt.s32.totalorder %s759_s17, 2 }
  0x17   : > { %s969_s9 = smov (%p30_p12, %s29_s9), 0  ;;  %p870_p2 = por %p132_p11, %p48_p13 }
  0x18   : > { %s36_s19 = ssub.s32 %s755_s16, %s969_s9  ;;  %s192_s23 = sand.u32 1, %s747_s14  }
  0x19   : > { %p39_p6 = scmp.eq.s32.totalorder %s36_s19, 0  ;;  %p50_p8 = por %p49_p0, %p48_p13 }
  0x1a   : > { %s476_s24 = sshll.u32 %s192_s23, 6  ;;  %s492_s18 = sshll.u32 %s755_s16, 6 }
  0x1b   : > { %s880_s25 = scalar_select %p39_p6, %s747_s14, %s41_s10  }
  0x1c   : > { %s204_s29 = scalar_lea.hbm %s954_s0, %s492_s18  ;;  %s196_s4 = scalar_lea.vmem [#allocation2], %s476_s24 }
  0x1d   : > { %s205_s30 = sshll.u32 %s204_s29, 4  ;;  %s207_s7 = sshll.u32 %s196_s4, 4  ;;  %s206_s30 = int_to_ptr.hbm [resolvable:$true] %s205_s30  ;;  %s208_s7 = int_to_ptr.vmem [resolvable:$true] %s207_s7 }
  0x1e   : > { %p515_p9 = pnand %p524_p4, %p50_p8  ;;  %s193_s8 = scalar_lea.sflag [#allocation3], %s192_s23 }
  0x1f   : > { %219 = sbr.rel (%p843_p7) target bundleno = 180 (0xb4), region = 32  ;;  %s893_s10 = sand.u32 (!%p843_p7), 1, %s743_s13  }
  0x20   : > { %517 = dma.hbm_to_vmem [thread:$0]  (!%p515_p9), %s206_s30, 1024, %s208_s7, %s193_s8, %s762_s5, %s762_s5, %s763_s6  }
  0x21   : > { %s481_s19 = sshll.u32 (!%p843_p7), %s893_s10, 6  ;;  %s222_s24 = scalar_lea.sflag (!%p843_p7), [#allocation3], %s893_s10 }
  0x22   : > { %s225_s18 = scalar_lea.vmem (!%p843_p7), [#allocation2], %s481_s19 }
  0x24   : > { %726 = dma.done.wait (%p830_p3), %s222_s24, 1024  }
  0x25   : > { %728 = vsyncadd (%p830_p3), %s222_s24, 4294966272 }
  0x26   : > { %730 = dma.done.wait (%p824_p1), [#allocation6], 512  }
  0x27   : > { %732 = vsyncadd (%p824_p1), [#allocation6], 4294966784  ;;  %v267_v0 = vld [vmem:[%s225_s18 + $0x10] sm:$0xff]  ;;  %v265_v1 = vld [vmem:[%s225_s18] sm:$0xff]  ;;  %s765_s26 = smov 64   ;;  %s905_s20 = scalar_lea.vmem [#allocation8], %s481_s19 }
  0x28   : > { %285 = vrot.lane.b32.xlu1 %v267_v0, %s765_s26  ;;  %281 = vrot.lane.b32.xlu0 %v265_v1, %s765_s26  ;;  %v269_v2 = vld [vmem:[%s225_s18 + $0x20] sm:$0xff]  ;;  %v268_v3 = vld [vmem:[%s225_s18 + $0x18] sm:$0xff]  ;;  %v307_v10 = vld [vmem:[#allocation7] sm:$0xff]  ;;  %s494_s21 = sshll.u32 %s751_s15, 6  ;;  %s357_s27 = sshll.u32 %s905_s20, 4  ;;  %s358_s27 = int_to_ptr.vmem [resolvable:$true] %s357_s27 }
  0x29   : > { %289 = vrot.lane.b32.xlu2 %v269_v2, %s765_s26  ;;  %v266_v4 = vld [vmem:[%s225_s18 + $0x8] sm:$0xff]  ;;  %v272_v6 = vld [vmem:[%s225_s18 + $0x38] sm:$0xff]  ;;  %v271_v7 = vld [vmem:[%s225_s18 + $0x30] sm:$0xff]  ;;  %s356_s23 = scalar_lea.hbm %s957_s3, %s494_s21  ;;  %s342_s15 = scalar_lea.sflag [#allocation4], %s893_s10 }
  0x2a   : > { %v270_v5 = vld [vmem:[%s225_s18 + $0x28] sm:$0xff]  ;;  %v305_v8 = vld [vmem:[#allocation5] sm:$0xff]  ;;  %v308_v16 = vld [vmem:[#allocation7 + $0x8] sm:$0xff]  ;;  %s359_s28 = sshll.u32 %s356_s23, 4  ;;  %s693_s8 = scalar_lea.hbm %s957_s3, 128  ;;  %s360_s28 = int_to_ptr.hbm [resolvable:$true] %s359_s28 }
  0x2b   : > { %v313_v9 = vmul.f32 %v305_v8, %v269_v2  ;;  %v306_v14 = vld [vmem:[#allocation5 + $0x8] sm:$0xff]  ;;  %v311_v20 = vmul.f32 %v305_v8, %v267_v0  ;;  %v309_v21 = vmul.f32 %v305_v8, %v265_v1  ;;  %v315_v37 = vmul.f32 %v305_v8, %v271_v7  ;;  %s687_s29 = sshra.s32 %s360_s28, 4  ;;  %s688_s29 = int_to_ptr.hbm [resolvable:$true] %s687_s29 }
  0x2c   : > { %v314_v15 = vmul.f32 %v306_v14, %v270_v5  ;;  %v312_v28 = vmul.f32 %v306_v14, %v268_v3  ;;  %v310_v29 = vmul.f32 %v306_v14, %v266_v4  ;;  %v316_v36 = vmul.f32 %v306_v14, %v272_v6  ;;  %s689_s30 = scalar_lea.hbm %s688_s29, 64  ;;  %p694_p11 = scmp.lt.s32.totalorder %s688_s29, %s957_s3 }
  0x2d   : > { %p690_p1 = scmp.ne.s32.totalorder %s688_s29, %s689_s30  ;;  %p695_p12 = scmp.lt.s32.totalorder %s693_s8, %s689_s30 }
  0x2f   : > { %p691_p3 = pnand %p690_p1, %p870_p2  ;;  %p696_p13 = por %p695_p12, %p694_p11 }
  0x30   : > { %287 = vrot.lane.b32.xlu1 %v268_v3, %s765_s26  ;;  %283 = vrot.lane.b32.xlu0 %v266_v4, %s765_s26 }
  0x31   : > { %291 = vrot.lane.b32.xlu2 %v270_v5, %s765_s26  ;;  %p692_p7 = pneg %p691_p3 }
  0x33   : > { %p697_p0 = pnand %p696_p13, %p692_p7 }
  0x38   : > { %295 = vrot.lane.b32.xlu1 %v272_v6, %s765_s26  ;;  %293 = vrot.lane.b32.xlu0 %v271_v7, %s765_s26 }
  0x83   : > { %v290_v11 = vpop.permute.xlu2 %289 }
  0x84   : > { %v321_v12 = vmul.f32 %v307_v10, %v290_v11 }
  0x86   : > { %v329_v13 = vadd.f32 %v321_v12, %v313_v9 }
  0x88   : > { %337 = vst [vmem:[%s905_s20 + $0x20] sm:$0xff] %v329_v13 }
  0x8b   : > { %v292_v17 = vpop.permute.xlu2 %291 }
  0x8c   : > { %v322_v18 = vmul.f32 %v308_v16, %v292_v17 }
  0x8e   : > { %v330_v19 = vadd.f32 %v322_v18, %v314_v15 }
  0x90   : > { %338 = vst [vmem:[%s905_s20 + $0x28] sm:$0xff] %v330_v19 }
  0x9a   : > { %v286_v22 = vpop.permute.xlu1 %285  ;;  %v282_v23 = vpop.permute.xlu0 %281 }
  0x9b   : > { %v319_v24 = vmul.f32 %v307_v10, %v286_v22  ;;  %v317_v25 = vmul.f32 %v307_v10, %v282_v23 }
  0x9d   : > { %v327_v26 = vadd.f32 %v319_v24, %v311_v20  ;;  %v325_v27 = vadd.f32 %v317_v25, %v309_v21 }
  0x9f   : > { %335 = vst [vmem:[%s905_s20 + $0x10] sm:$0xff] %v327_v26 }
  0xa0   : > { %333 = vst [vmem:[%s905_s20] sm:$0xff] %v325_v27 }
  0xa2   : > { %v288_v30 = vpop.permute.xlu1 %287  ;;  %v284_v31 = vpop.permute.xlu0 %283 }
  0xa3   : > { %v320_v32 = vmul.f32 %v308_v16, %v288_v30  ;;  %v318_v33 = vmul.f32 %v308_v16, %v284_v31 }
  0xa5   : > { %v328_v34 = vadd.f32 %v320_v32, %v312_v28  ;;  %v326_v35 = vadd.f32 %v318_v33, %v310_v29 }
  0xa7   : > { %336 = vst [vmem:[%s905_s20 + $0x18] sm:$0xff] %v328_v34 }
  0xa8   : > { %334 = vst [vmem:[%s905_s20 + $0x8] sm:$0xff] %v326_v35 }
  0xaa   : > { %v296_v38 = vpop.permute.xlu1 %295  ;;  %v294_v39 = vpop.permute.xlu0 %293 }
  0xab   : > { %v324_v40 = vmul.f32 %v308_v16, %v296_v38  ;;  %v323_v41 = vmul.f32 %v307_v10, %v294_v39 }
  0xad   : > { %v332_v42 = vadd.f32 %v324_v40, %v316_v36  ;;  %v331_v43 = vadd.f32 %v323_v41, %v315_v37 }
  0xaf   : > { %340 = vst [vmem:[%s905_s20 + $0x38] sm:$0xff] %v332_v42 }
  0xb0   : > { %339 = vst [vmem:[%s905_s20 + $0x30] sm:$0xff] %v331_v43 }
  0xb1   : > { %700 = shalt.err (!%p697_p0)
}
  0xb2   : > { %s766_s10 = smov 128   ;;  %s767_s18 = smov 8  }
  0xb3   : > { %505 = dma.vmem_to_hbm [thread:$0]  (%p870_p2), %s358_s27, 1024, %s360_s28, %s342_s15, %s766_s10, %s766_s10, %s767_s18  }
  0xb4 PF: > { %s374_s26 = sand.u32 1, %s739_s12   ;;  %p519_p4 = pnand %p475_p10, %p835_p5 }
  0xb5   : > { %s375_s20 = scalar_lea.sflag [#allocation4], %s374_s26 }
  0xb6   : > { %p520_p6 = pneg %p519_p4 }
  0xb8   : > { %734 = dma.done.wait (%p520_p6), %s375_s20, 1024  }
  0xb9   : > { %736 = vsyncadd (%p520_p6), %s375_s20, 4294966272  ;;  %s20_s17 = sadd.s32 1, %s759_s17   ;;  %s963_s12 = smov %s743_s13 }
  0xba   : > { %p17_p8 = scmp.ge.s32.totalorder %s20_s17, 4   ;;  %s964_s13 = smov %s747_s14 }
  0xbb   : > { %s965_s14 = smov %s880_s25  ;;  %s966_s15 = smov %s755_s16 }
  0xbc   : > { %s967_s16 = smov %s969_s9  ;;  %19 = sbr.rel (!%p17_p8) target bundleno = 7 (0x7), region = 87 }
  0xc1   :  { %381 = vsyncpa [#allocation3], 1 }
  0xc2   :  { %383 = vsyncpa [#allocation3 + $0x1], 1 }
  0xc3   :  { %384 = vsyncpa [#allocation6], 1 }
  0xc4   :  { %385 = vsyncpa [#allocation4], 1 }
  0xc5   :  { %387 = vsyncpa [#allocation4 + $0x1], 1 }

</bundles_post_ra>
